<compile_context>
chip_gen: v7x
topology: tpu7x:2x2x1
jax: 0.10.0
libtpu: 0.0.40
codegen_flags: <defaults>
</compile_context>

<pallas_src>
import functools

import jax
import jax.numpy as jnp
from jax.experimental import pallas as pl
from jax.experimental.pallas import tpu as pltpu


def _cdiv(a: int, b: int) -> int:
    return -(-a // b)


def _rup(a: int, b: int) -> int:
    return _cdiv(a, b) * b


# ------------------------------- kernels -----------------------------------


def _broadcast_kernel(xs_ref, o_ref):
    # xs_ref: (R, 1, Lt) block of x_short "groups"; o_ref: (R, k, Lt).
    # out[g, j, :] = x_short[g, :] -- sublane broadcast along axis 1 only.
    o_ref[...] = jnp.broadcast_to(xs_ref[...], o_ref.shape)


def _repeat_kernel(xs_ref, o_ref, *, k: int):
    # xs_ref: (R, Lt); o_ref: (T, Lt) with T == R*k, or T == out_len <= R*k on
    # the single-block (truncated) path.
    rep = jnp.repeat(xs_ref[...], k, axis=0)
    t = o_ref.shape[0]
    o_ref[...] = rep if t == rep.shape[0] else rep[:t, :]


# --------------------------- tile selection ---------------------------------


def _hw_budgets():
    """Generation-aware (target_output_block_bytes, vmem_limit_bytes)."""
    vmem_cap = None
    try:
        vmem_cap = getattr(pltpu.get_tpu_info(), "vmem_capacity_bytes", None)
    except Exception:  # query unavailable (e.g. interpret / AOT) -> safe defaults
        vmem_cap = None
    if vmem_cap is None:
        return 8 * 1024 * 1024, 32 * 1024 * 1024       # safe everywhere
    if vmem_cap >= 100 * 1024 * 1024:
        return 16 * 1024 * 1024, 64 * 1024 * 1024      # v5e / v6e (128 MiB VMEM)
    return 10 * 1024 * 1024, 48 * 1024 * 1024          # v7x-class (64 MiB / TC)


def _lane_tile(L, k, itemsize, target_bytes):
    """Lane tile (multiple of 128) so one group of k output rows fits budget."""
    if k * L * itemsize <= target_bytes or L <= 128:
        return L, 1
    lt = (target_bytes // (k * itemsize)) // 128 * 128
    lt = max(128, min(lt, (L // 128) * 128))
    return lt, _cdiv(L, lt)


# ------------------------------- wrapper ------------------------------------


def naive_upsample(x: jax.Array, x_short: jax.Array, k: int,
                   *, target_block_bytes: int | None = None,
                   vmem_limit_bytes: int | None = None) -> jax.Array:
    """Pallas implementation of NaiveUpSampling.forward(x, x_short)."""
    S = x.shape[0]                         # only the target length of x is used
    S_short, B, D = x_short.shape
    dtype = x_short.dtype
    itemsize = jnp.dtype(dtype).itemsize
    L = B * D
    out_len = min(S, k * S_short)          # torch truncates the expansion to S

    if out_len == 0 or L == 0:
        return jnp.zeros((out_len, B, D), dtype=dtype)

    tgt, vmem_limit = _hw_budgets()
    if target_block_bytes is not None:
        tgt = int(target_block_bytes)
    if vmem_limit_bytes is not None:
        vmem_limit = int(vmem_limit_bytes)
    vmem_budget = int(vmem_limit * 0.9)    # headroom for Mosaic scratch

    sub = max(8, 32 // itemsize)           # sublane tile: 8 f32 / 16 bf16 / 32 i8
    G = _cdiv(out_len, k)                  # x_short rows that feed the output
    Lt, lane_blocks = _lane_tile(L, k, itemsize, tgt)
    lt_pad = _rup(Lt, 128)

    cost = pl.CostEstimate(flops=0, transcendentals=0,
                           bytes_accessed=(G + out_len) * L * itemsize)
    cparams = pltpu.CompilerParams(
        dimension_semantics=("parallel", "parallel"),
        vmem_limit_bytes=vmem_limit)
    big_enough_to_split = out_len * L * itemsize >= 4 * 1024 * 1024

    # ---- Path A: 3-D sublane-broadcast (zero interleave) --------------------
    if out_len % k == 0 and k % sub == 0:
        xs3 = x_short.reshape(S_short, 1, L)         # free, metadata only
        out_blk = k * lt_pad * itemsize              # output bytes per group
        R = max(1, min(G, tgt // out_blk))           # groups per grid step
        if lane_blocks == 1 and big_enough_to_split and _cdiv(G, R) < 2 and G >= 2:
            R = _cdiv(G, 2)                          # keep both v7x TCs busy

        def footprint_a(r):                          # double-buffered in + out
            out_b = r * k * lt_pad * itemsize
            in_b = r * sub * lt_pad * itemsize       # (1,Lt) tile pads to (sub,·)
            return 2 * (out_b + in_b)

        while R > 1 and footprint_a(R) > vmem_budget:
            R = max(1, R // 2)

        out3 = pl.pallas_call(
            _broadcast_kernel,
            out_shape=jax.ShapeDtypeStruct((G, k, L), dtype),
            grid=(_cdiv(G, R), lane_blocks),
            in_specs=[pl.BlockSpec((R, 1, Lt), lambda i, j: (i, 0, j))],
            out_specs=pl.BlockSpec((R, k, Lt), lambda i, j: (i, 0, j)),
            compiler_params=cparams,
            cost_estimate=cost,
        )(xs3)
        return out3.reshape(out_len, B, D)           # free row-major reshape

    # ---- Path B: 2-D output, in-kernel repeat_interleave --------------------
    xs2 = x_short.reshape(S_short, L)                # free, metadata only
    out_blk = k * lt_pad * itemsize                  # output bytes per group
    R = max(1, min(G, tgt // out_blk))               # groups per grid step
    single = R >= G
    if single and lane_blocks == 1 and big_enough_to_split and G >= 2 * sub:
        single = False                               # split for v7x megacore
        R = _cdiv(G, 2)
    if single:
        # One row-block: output block spans the (possibly truncated) out_len;
        # input block covers only the rows feeding it, rounded up to a legal
        # sublane multiple -- never all of a much larger x_short.
        R = min(S_short, _rup(G, sub))
        T = out_len
    else:
        R = max(sub, R // sub * sub)                 # tile-legal block dims
        T = R * k

    def footprint_b(r, t):                           # in + out + repeat temp
        out_b = _rup(t, sub) * lt_pad * itemsize
        in_b = _rup(r, sub) * lt_pad * itemsize
        return 2 * (out_b + in_b) + out_b

    while not single and R > sub and footprint_b(R, R * k) > vmem_budget:
        R = max(sub, (R // 2) // sub * sub)
        T = R * k

    out2 = pl.pallas_call(
        functools.partial(_repeat_kernel, k=k),
        out_shape=jax.ShapeDtypeStruct((out_len, L), dtype),
        grid=(_cdiv(out_len, T), lane_blocks),
        in_specs=[pl.BlockSpec((R, Lt), lambda i, j: (i, j))],
        out_specs=pl.BlockSpec((T, Lt), lambda i, j: (i, j)),
        compiler_params=cparams,
        cost_estimate=cost,
    )(xs2)
    return out2.reshape(out_len, B, D)


if __name__ == "__main__":
    key = jax.random.PRNGKey(0)

    def ref_upsample(x, x_short, k):
        return jnp.repeat(x_short, k, axis=0)[: x.shape[0]]

    cases = [
        # 1) Module-like shapes: seq=10, k=4 -> truncated last group (Path B).
        dict(seq=10, k=4, batch=4, d_model=32, kwargs={}),
        # 2) k fills a sublane tile and seq % k == 0 -> broadcast Path A.
        dict(seq=64, k=8, batch=4, d_model=32, kwargs={}),
        # 3) Longer seq, forced tiny blocks -> multi-step grid + partial edge
        #    blocks on the repeat path.
        dict(seq=1037, k=4, batch=4, d_model=32,
             kwargs=dict(target_block_bytes=64 * 1024)),
        # 4) Longer seq, forced tiny blocks -> multi-step grid on the
        #    broadcast path.
        dict(seq=2048, k=8, batch=4, d_model=32,
             kwargs=dict(target_block_bytes=64 * 1024)),
    ]

    for idx, c in enumerate(cases):
        kx, ks, key = jax.random.split(key, 3)
        seq, kk, b, d = c["seq"], c["k"], c["batch"], c["d_model"]
        short = -(-seq // kk)
        x = jax.random.normal(kx, (seq, b, d), dtype=jnp.float32)
        x_short = jax.random.normal(ks, (short, b, d), dtype=jnp.float32)

        out = naive_upsample(x, x_short, kk, **c["kwargs"])
        jax.block_until_ready(out)
        ref = ref_upsample(x, x_short, kk)
        assert out.shape == ref.shape, (idx, out.shape, ref.shape)
        assert bool(jnp.array_equal(out, ref)), f"case {idx}: mismatch vs reference"

    print("KERNEL_OK")
</pallas_src>

<mosaic_0001>
module attributes {stable_mosaic.version = 11 : i64} {
  func.func @_repeat_kernel(%arg0: i32, %arg1: i32, %arg2: memref<3x128xf32, #tpu.memory_space<vmem>>, %arg3: memref<10x128xf32, #tpu.memory_space<vmem>>) attributes {dimension_semantics = [#tpu.dimension_semantics<parallel>, #tpu.dimension_semantics<parallel>], iteration_bounds = array<i64: 1, 1>, scalar_prefetch = 0 : i64, scratch_operands = 0 : i64, tpu.core_type = #tpu.core_type<tc>, window_params = [{transform_indices = @transform_0, window_bounds = array<i64: 3, 128>}, {transform_indices = @transform_1, window_bounds = array<i64: 10, 128>}]} {
    %c0 = arith.constant 0 : index
    %c0_0 = arith.constant 0 : index
    %0 = vector.load %arg2[%c0, %c0_0] : memref<3x128xf32, #tpu.memory_space<vmem>>, vector<3x128xf32>
    %1 = vector.shape_cast %0 : vector<3x128xf32> to vector<3x1x128xf32>
    %2 = vector.broadcast %1 : vector<3x1x128xf32> to vector<3x4x128xf32>
    %3 = vector.shape_cast %2 : vector<3x4x128xf32> to vector<12x128xf32>
    %4 = vector.extract_strided_slice %3 {offsets = [0, 0], sizes = [10, 128], strides = [1, 1]} : vector<12x128xf32> to vector<10x128xf32>
    %c0_1 = arith.constant 0 : index
    %c0_2 = arith.constant 0 : index
    %5 = vector.load %arg3[%c0_1, %c0_2] : memref<10x128xf32, #tpu.memory_space<vmem>>, vector<10x128xf32>
    tpu.vector_store %arg3[%c0_1, %c0_2], %4 {strides = array<i32>} : memref<10x128xf32, #tpu.memory_space<vmem>>, vector<10x128xf32>,
    return
  }
  func.func @transform_0(%arg0: i32, %arg1: i32) -> (i32, i32) {
    %c0_i32 = arith.constant 0 : i32
    return %arg0, %arg1 : i32, i32
  }
  func.func @transform_1(%arg0: i32, %arg1: i32) -> (i32, i32) {
    %c0_i32 = arith.constant 0 : i32
    return %arg0, %arg1 : i32, i32
  }
}

</mosaic_0001>

<bundles_post_ra>
// kernel: tpu_custom_call.1
= control target key start
LH: loop header
LB: loop body
LE: loop exit
PB: predicated region body
PF: predicated region fallthrough
CT: control target
= control target key end

     0   :  { %6 = vsyncpa [#allocation3], 0  ;;  %s173_s0 = inlined_call_operand.hbm [shape: f32[3,128], index: 0, kind: input, shape index: {}]   ;;  %s174_s1 = inlined_call_operand.hbm [shape: f32[10,128], index: 1, kind: output, shape index: {}]  }
   0x1   :  { %7 = vsyncpa [#allocation4], 0  ;;  %s134_s6 = smov [#allocation2]   ;;  %s86_s10 = scalar_lea.hbm %s173_s0, 64 }
   0x2   :  { %s14_s7 = sshll.u32 %s134_s6, 4  ;;  %p87_p0 = scmp.ne.s32.totalorder %s173_s0, %s86_s10  ;;  %s15_s7 = int_to_ptr.vmem [resolvable:$true] %s14_s7 }
   0x3   :  { %p90_p1 = scmp.lt.u32.totalorder %s86_s10, %s173_s0 }
   0x5   :  { %p92_p2 = pnand %p90_p1, %p87_p0 }
   0x7   :  { %95 = shalt.err (!%p92_p2)
}
   0x8   :  { %s96_s15 = scalar_lea.vmem %s15_s7, 64  ;;  %p101_p4 = scmp.lt.s32.totalorder %s15_s7, %s15_s7 }
   0x9   :  { %p97_p3 = scmp.ne.s32.totalorder %s15_s7, %s96_s15  ;;  %p102_p5 = scmp.lt.s32.totalorder %s96_s15, %s96_s15 }
   0xb   :  { %p103_p6 = por %p102_p5, %p101_p4 }
   0xd   :  { %p104_p7 = pnand %p103_p6, %p97_p3 }
   0xf   :  { %107 = shalt.err (!%p104_p7)
}
  0x10   :  { %17 = dma.hbm_to_vmem [thread:$0]  %s173_s0, 64, %s15_s7, [#allocation3]  }
  0x11   :  { %130 = dma.done.wait [#allocation3], 64  }
  0x12   :  { %131 = vsyncadd [#allocation3], 4294967232  ;;  %v34_v0 = vlaneseq  ;;  %v135_v1 = vmov 1966171168   ;;  %s136_s18 = smov [#allocation5]  }
  0x13   :  { %v32_v2 = vunpack.c.l.s4 %v135_v1  ;;  %v80_v7 = vld.sshfl [vmem:[#allocation2] sm:$0x13 pattern:$0x75316420]  ;;  %s68_s19 = sshll.u32 %s136_s18, 4  ;;  %s69_s19 = int_to_ptr.vmem [resolvable:$true] %s68_s19 }
  0x14   :  { %v35_v3 = vshrl.u32 %v34_v0, 7  ;;  %v30_v8 = vcombine.high %v80_v7, %v80_v7  ;;  %s108_s0 = scalar_lea.vmem %s69_s19, 256  ;;  %p113_p9 = scmp.lt.s32.totalorder %s69_s19, %s69_s19 }
  0x15   :  { %v33_v4 = vunpack.c.0.s8 %v32_v2  ;;  %p109_p8 = scmp.ne.s32.totalorder %s69_s19, %s108_s0  ;;  %p114_p10 = scmp.lt.s32.totalorder %s108_s0, %s108_s0 }
  0x16   :  { %v48_v6 = vsub.s32 0, %v35_v3 }
  0x17   :  { %v36_v5 = vsub.s32 %v33_v4, %v35_v3  ;;  %p115_p11 = por %p114_p10, %p113_p9 }
  0x19   :  { %v37_v9 = vrot.slane %v80_v7, %v36_v5  ;;  %v44_v10 = vrot.slane %v30_v8, %v36_v5  ;;  %p116_p12 = pnand %p115_p11, %p109_p8 }
  0x1b   :  { %v49_v11 = vrot.slane %v37_v9, %v48_v6  ;;  %v45_v12 = vcombine.high %v37_v9, %v37_v9  ;;  %v53_v13 = vrot.slane %v44_v10, %v48_v6 }
  0x1d   :  { %v57_v14 = vrot.slane %v45_v12, %v48_v6  ;;  %v59_v15 = vcombine.low %v49_v11, %v53_v13 }
  0x1f   :  { %62 = vst [vmem:[#allocation5 + $0x8] sm:$0x3] %v57_v14  ;;  %61 = vst [vmem:[#allocation5] sm:$0xff] %v59_v15 }
  0x20   :  { %119 = shalt.err (!%p116_p12)
}
  0x21   :  { %s120_s22 = scalar_lea.hbm %s174_s1, 256 }
  0x22   :  { %p121_p13 = scmp.ne.s32.totalorder %s174_s1, %s120_s22  ;;  %p124_p0 = scmp.lt.u32.totalorder %s120_s22, %s174_s1 }
  0x24   :  { %p126_p1 = pnand %p124_p0, %p121_p13 }
  0x26   :  { %129 = shalt.err (!%p126_p1)
}
  0x27   :  { %s137_s27 = smov 128   ;;  %s138_s28 = smov 8  }
  0x28   :  { %74 = dma.vmem_to_hbm [thread:$0]  %s69_s19, 256, %s174_s1, [#allocation4], %s137_s27, %s137_s27, %s138_s28  }
  0x29   :  { %132 = dma.done.wait [#allocation4], 256  }
  0x2a   :  { %133 = vsyncadd [#allocation4], 4294967040 }
  0x2b   :  { %78 = vsyncpa [#allocation3], 1 }
  0x2c   :  { %79 = vsyncpa [#allocation4], 1 }

</bundles_post_ra>
